<compile_context>
chip_gen: v6e
topology: v6e:2x2x1
jax: 0.10.0
libtpu: 0.0.40
codegen_flags: <defaults>
</compile_context>

<pallas_src>
import math

import jax
import jax.numpy as jnp
from jax.experimental import pallas as pl
from jax.experimental.pallas import tpu as pltpu


def make_pe_table(d_model: int, max_len: int = 5000, dtype=jnp.float32) -> jnp.ndarray:
    """Deterministic sinusoidal table, identical formula to the torch __init__."""
    assert d_model % 2 == 0, "d_model must be even (sin/cos interleave)"
    position = jnp.arange(max_len, dtype=jnp.float32)[:, None]            # (max_len, 1)
    div_term = jnp.exp(
        jnp.arange(0, d_model, 2, dtype=jnp.float32) * (-math.log(10000.0) / d_model)
    )                                                                     # (d_model/2,)
    angles = position * div_term                                          # (max_len, d_model/2)
    pe = jnp.zeros((max_len, d_model), dtype=jnp.float32)
    pe = pe.at[:, 0::2].set(jnp.sin(angles))
    pe = pe.at[:, 1::2].set(jnp.cos(angles))
    return pe.astype(dtype)


def _pos_embed_kernel(x_ref, pe_ref, o_ref):
    # x_ref : (Bt, ts, 1) -- batch-tile of x with seq on sublanes
    # pe_ref: (ts, D)     -- positional tile; VMEM-resident across the batch axis
    # o_ref : (Bt, ts, D) -- full-d_model (lane-dense) output tile
    x = x_ref[...].astype(jnp.float32)
    pe = pe_ref[...].astype(jnp.float32)
    o_ref[...] = (x + pe[None, :, :]).astype(o_ref.dtype)


def _vmem_budgets():
    """Generation-aware (budget_for_blocks, compiler_vmem_limit) in bytes."""
    try:
        cap = int(pltpu.get_tpu_info().vmem_capacity_bytes)
    except Exception:
        cap = 64 * 1024 * 1024  # conservative fallback (v7x per-TC VMEM)
    vmem_limit = min((cap * 3) // 4, 96 * 1024 * 1024)
    block_budget = min(cap // 3, 40 * 1024 * 1024)
    return block_budget, vmem_limit


def _sublane(itemsize: int) -> int:
    # f32 -> 8, bf16 -> 16, int8/fp8 -> 32 sublane packing
    return max(8, 32 // max(int(itemsize), 1))


def _pick_tiles(B, S, D, x_item, pe_item, out_item, budget):
    """Pick (batch_tile, seq_tile) so double-buffered pe+x+out blocks fit `budget`."""
    def need(bt, ts):
        return 2 * (ts * D * pe_item + bt * ts * D * out_item + bt * ts * x_item)

    # 1) Whole problem fits: single full-extent block (always layout-legal).
    if need(B, S) <= budget:
        return B, S

    sub = max(_sublane(x_item), _sublane(pe_item), _sublane(out_item))

    # 2) Full batch folded, seq tiled: largest sublane-aligned ts that fits.
    per_seq_row = 2 * (D * pe_item + B * D * out_item + B * x_item)
    ts = min(S, (budget // per_seq_row) // sub * sub)
    if ts >= sub:
        return B, ts

    # 3) Huge batch*d_model: minimum seq tile, tile the batch too.
    ts = min(S, sub)
    per_batch_row = 2 * ts * (D * out_item + x_item)
    bt = max(1, min(B, (budget - 2 * ts * D * pe_item) // max(per_batch_row, 1)))
    return bt, ts


def position_embedding_forward(x: jnp.ndarray, pe_table: jnp.ndarray, *,
                               out_dtype=None,
                               seq_tile: int | None = None,
                               batch_tile: int | None = None) -> jnp.ndarray:
    """out[b, s, d] = x[b, s] + pe_table[s, d]  (Pallas TPU kernel)."""
    B, S = x.shape
    max_len, D = pe_table.shape
    if S > max_len:
        raise ValueError(f"sequence length {S} exceeds pe table max_len {max_len}")

    if out_dtype is None:
        # Matches PyTorch type promotion of x + pe (f32 for the reference module).
        out_dtype = jnp.promote_types(x.dtype, pe_table.dtype)
    out_dtype = jnp.dtype(out_dtype)

    x_item = jnp.dtype(x.dtype).itemsize
    pe_item = jnp.dtype(pe_table.dtype).itemsize
    out_item = out_dtype.itemsize

    budget, vmem_limit = _vmem_budgets()
    bt_auto, ts_auto = _pick_tiles(B, S, D, x_item, pe_item, out_item, budget)
    bt = int(batch_tile) if batch_tile is not None else int(bt_auto)
    ts = int(seq_tile) if seq_tile is not None else int(ts_auto)

    num_s = pl.cdiv(S, ts)   # ragged tail blocks are masked by Pallas
    num_b = pl.cdiv(B, bt)

    # Layout-preserving trailing-singleton view of x (metadata only, no HBM copy);
    # keeps the sequence dim on sublanes so broadcasting against (ts, D) pe is a
    # native lane-broadcast.
    x3 = x.reshape(B, S, 1)

    cost = pl.CostEstimate(
        flops=B * S * D,
        transcendentals=0,
        bytes_accessed=B * S * x_item + S * D * pe_item + B * S * D * out_item,
    )

    return pl.pallas_call(
        _pos_embed_kernel,
        out_shape=jax.ShapeDtypeStruct((B, S, D), out_dtype),
        grid_spec=pltpu.PrefetchScalarGridSpec(
            num_scalar_prefetch=0,
            # seq tiles stream on the outer (parallel) axis; the batch-tile axis
            # is innermost and ignored by the pe index_map, so each pe tile is
            # DMA'd once per sequence tile and reused across batch tiles.
            grid=(num_s, num_b),
            in_specs=[
                pl.BlockSpec((bt, ts, 1), lambda si, bi: (bi, si, 0)),   # x view
                pl.BlockSpec((ts, D), lambda si, bi: (si, 0)),           # pe (b-indep)
            ],
            out_specs=pl.BlockSpec((bt, ts, D), lambda si, bi: (bi, si, 0)),
        ),
        compiler_params=pltpu.CompilerParams(
            dimension_semantics=("parallel", "arbitrary"),
            vmem_limit_bytes=vmem_limit,
        ),
        cost_estimate=cost,
    )(x3, pe_table)


if __name__ == "__main__":
    d_model = 32
    max_len = 64
    B, S = 2, 8

    key = jax.random.PRNGKey(0)
    x = jax.random.normal(key, (B, S), dtype=jnp.float32)
    pe_table = make_pe_table(d_model, max_len)

    # Default path: auto tile picker -> full-extent blocks, single grid step.
    out = jax.block_until_ready(position_embedding_forward(x, pe_table))
    ref = x[:, :, None] + pe_table[None, :S, :]
    assert out.shape == (B, S, d_model) and out.dtype == jnp.float32
    assert jnp.allclose(out, ref, atol=1e-6), "mismatch vs reference"

    # Multi-step grid with batch folded into the block and a ragged seq tail:
    # grid = (cdiv(20, 8), cdiv(4, 2)) = (3, 2); Pallas masks the tail block.
    B2, S2 = 4, 20
    x2 = jax.random.normal(jax.random.PRNGKey(1), (B2, S2), dtype=jnp.float32)
    out2 = jax.block_until_ready(
        position_embedding_forward(x2, pe_table, seq_tile=8, batch_tile=2))
    ref2 = x2[:, :, None] + pe_table[None, :S2, :]
    assert out2.shape == (B2, S2, d_model)
    assert jnp.allclose(out2, ref2, atol=1e-6), "mismatch vs reference (tiled path)"

    # Reduced-precision store path: compute in f32, cast at the store.
    out3 = jax.block_until_ready(
        position_embedding_forward(x, pe_table, out_dtype=jnp.bfloat16))
    ref3 = (x[:, :, None] + pe_table[None, :S, :]).astype(jnp.bfloat16)
    assert out3.dtype == jnp.bfloat16
    assert jnp.allclose(out3.astype(jnp.float32), ref3.astype(jnp.float32),
                        atol=1e-2), "mismatch vs reference (bf16 store path)"

    print("KERNEL_OK")
</pallas_src>

<mosaic_0001>
module attributes {stable_mosaic.version = 11 : i64} {
  func.func @_pos_embed_kernel(%arg0: i32, %arg1: i32, %arg2: memref<2x8x1xf32, #tpu.memory_space<vmem>>, %arg3: memref<8x32xf32, #tpu.memory_space<vmem>>, %arg4: memref<2x8x32xf32, #tpu.memory_space<vmem>>) attributes {dimension_semantics = [#tpu.dimension_semantics<parallel>, #tpu.dimension_semantics<arbitrary>], iteration_bounds = array<i64: 1, 1>, scalar_prefetch = 0 : i64, scratch_operands = 0 : i64, tpu.core_type = #tpu.core_type<tc>, window_params = [{transform_indices = @transform_0, window_bounds = array<i64: 2, 8, 1>}, {transform_indices = @transform_1, window_bounds = array<i64: 8, 32>}, {transform_indices = @transform_2, window_bounds = array<i64: 2, 8, 32>}]} {
    %c0 = arith.constant 0 : index
    %c0_0 = arith.constant 0 : index
    %c0_1 = arith.constant 0 : index
    %0 = vector.load %arg2[%c0, %c0_0, %c0_1] : memref<2x8x1xf32, #tpu.memory_space<vmem>>, vector<2x8x1xf32>
    %c0_2 = arith.constant 0 : index
    %c0_3 = arith.constant 0 : index
    %1 = vector.load %arg3[%c0_2, %c0_3] : memref<8x32xf32, #tpu.memory_space<vmem>>, vector<8x32xf32>
    %2 = vector.shape_cast %1 : vector<8x32xf32> to vector<1x8x32xf32>
    %3 = vector.broadcast %0 : vector<2x8x1xf32> to vector<2x8x32xf32>
    %4 = vector.broadcast %2 : vector<1x8x32xf32> to vector<2x8x32xf32>
    %5 = arith.addf %3, %4 : vector<2x8x32xf32>
    %c0_4 = arith.constant 0 : index
    %c0_5 = arith.constant 0 : index
    %c0_6 = arith.constant 0 : index
    %6 = vector.load %arg4[%c0_4, %c0_5, %c0_6] : memref<2x8x32xf32, #tpu.memory_space<vmem>>, vector<2x8x32xf32>
    tpu.vector_store %arg4[%c0_4, %c0_5, %c0_6], %5 {strides = array<i32>} : memref<2x8x32xf32, #tpu.memory_space<vmem>>, vector<2x8x32xf32>,
    return
  }
  func.func @transform_0(%arg0: i32, %arg1: i32) -> (i32, i32, i32) {
    %c0_i32 = arith.constant 0 : i32
    %c0_i32_0 = arith.constant 0 : i32
    return %arg1, %arg0, %c0_i32 : i32, i32, i32
  }
  func.func @transform_1(%arg0: i32, %arg1: i32) -> (i32, i32) {
    %c0_i32 = arith.constant 0 : i32
    %c0_i32_0 = arith.constant 0 : i32
    return %arg0, %c0_i32 : i32, i32
  }
  func.func @transform_2(%arg0: i32, %arg1: i32) -> (i32, i32, i32) {
    %c0_i32 = arith.constant 0 : i32
    %c0_i32_0 = arith.constant 0 : i32
    return %arg1, %arg0, %c0_i32 : i32, i32, i32
  }
}

</mosaic_0001>

<bundles_post_ra>
// kernel: tpu_custom_call.1
= control target key start
LH: loop header
LB: loop body
LE: loop exit
PB: predicated region body
PF: predicated region fallthrough
CT: control target
= control target key end

     0   :  { %v73_v1 = vmov 0   ;;  %s104_s0 = inlined_call_operand.vmem [shape: f32[2,8,1], index: 0, kind: input, shape index: {}]   ;;  %s105_s1 = inlined_call_operand.vmem [shape: f32[64,32], index: 1, kind: input, shape index: {}]   ;;  %s106_s2 = inlined_call_operand.hbm [shape: f32[2,8,32], index: 2, kind: output, shape index: {}]  }
   0x1   :  { %v12_v0 = vld [vmem:[%s104_s0] sm:$0xff]  ;;  %50 = vset.pattern.permute.xlu0 %v73_v1 }
   0x2   :  { %7 = vsyncpa [#allocation3], 0  ;;  %17 = vperm.xlu0 %50, %v12_v0   ;;  %v13_v2 = vld [vmem:[%s104_s0 + $0x8] sm:$0xff]  ;;  %v14_v3 = vld [vmem:[%s105_s1] sm:$0xff]  ;;  %vm27_vm0 = vcmask 261120   ;;  %s74_s15 = smov [#allocation2]  }
   0x3   :  { %s35_s16 = sshll.u32 %s74_s15, 4  ;;  %s36_s16 = int_to_ptr.vmem [resolvable:$true] %s35_s16 }
   0x4   :  { %s51_s17 = scalar_lea.vmem %s36_s16, 256  ;;  %p56_p1 = scmp.lt.s32.totalorder %s36_s16, %s36_s16 }
   0x5   :  { %p52_p0 = scmp.ne.s32.totalorder %s36_s16, %s51_s17  ;;  %p57_p2 = scmp.lt.s32.totalorder %s51_s17, %s51_s17 }
   0x6   :  { %22 = vperm.xlu0 %50, %v13_v2  }
   0x7   :  { %p58_p3 = por %p57_p2, %p56_p1 }
   0x9   :  { %p59_p4 = pnand %p58_p3, %p52_p0 }
  0x7d   :  { %v18_v4 = vpop.permute.xlu0 %17 }
  0x7e   :  { %v25_v5 = vadd.f32 %v18_v4, %v14_v3 }
  0x80   :  { %28 = vst.msk [vmem:[#allocation2] sm:$0xff] %vm27_vm0, %v25_v5 }
  0x81   :  { %v23_v6 = vpop.permute.xlu0 %22 }
  0x82   :  { %v26_v7 = vadd.f32 %v23_v6, %v14_v3 }
  0x84   :  { %29 = vst.msk [vmem:[#allocation2 + $0x8] sm:$0xff] %vm27_vm0, %v26_v7 }
  0x85   :  { %62 = shalt.err (!%p59_p4)
}
  0x86   :  { %s75_s0 = smov 128   ;;  %s76_s18 = smov 8  }
  0x87   :  { %41 = dma.vmem_to_hbm [thread:$0]  %s36_s16, 256, %s106_s2, [#allocation3], %s75_s0, %s75_s0, %s76_s18  }
  0x88   :  { %71 = dma.done.wait [#allocation3], 256  }
  0x89   :  { %72 = vsyncadd [#allocation3], 4294967040 }
  0x8a   :  { %45 = vsyncpa [#allocation3], 1 }

</bundles_post_ra>
